<compile_context>
chip_gen: v6e
topology: v6e:2x2x1
jax: 0.10.0
libtpu: 0.0.40
codegen_flags: <defaults>
</compile_context>

<pallas_src>
import functools

import jax
import jax.numpy as jnp
from jax.experimental import pallas as pl
from jax.experimental.pallas import tpu as pltpu


def _round_up(a, b):
    return (a + b - 1) // b * b


def _cdiv(a, b):
    return (a + b - 1) // b


def _physical_vmem_bytes():
    """Per-core VMEM capacity, with a conservative (v7x-sized) fallback."""
    try:
        info = pltpu.get_tpu_info()
        cap = int(getattr(info, "vmem_capacity_bytes", 0))
        if cap >= 16 * 2**20:
            return cap
    except Exception:
        pass
    return 64 * 2**20


def prepare_generator_weight(weight, *, tv=1024, mxu_dtype=None):
    """One-time (setup-time) cast + zero-pad of the (n_words, hidden) projection
    weight so the per-call forward path does no V*H-sized HBM work."""
    v, _ = weight.shape
    tv_eff = min(tv, _round_up(v, 128))
    v_pad = _round_up(v, tv_eff)
    w = weight
    if mxu_dtype is not None and w.dtype != mxu_dtype:
        w = w.astype(mxu_dtype)
    if v_pad != v:
        w = jnp.pad(w, ((0, v_pad - v), (0, 0)))
    return w


def _generator_kernel(x_ref, w_ref, o_ref, m_sc, s_sc, stage_ref, *,
                      num_v, tv, valid_last, needs_mask):
    # x_ref     : (tm, H)          row tile of flattened inputs (resident over j)
    # w_ref     : (tv, H)          vocab tile of the weight (PyTorch (V, H) layout)
    # o_ref     : (tm, V_pad)      resident lane-dense output slab (written at finalize)
    # m_sc,s_sc : (tm, 1) f32      running max / running sum of exp
    # stage_ref : (num_v, tm, tv)  f32 staging of raw logits, one slot per V tile
    j = pl.program_id(1)

    @pl.when(j == 0)
    def _init():
        m_sc[...] = jnp.full_like(m_sc, -jnp.inf)
        s_sc[...] = jnp.zeros_like(s_sc)

    # (tm, H) x (tv, H) contracted over H -> (tm, tv); f32 accumulation on the MXU.
    logits = jax.lax.dot_general(
        x_ref[...],
        w_ref[...],
        dimension_numbers=(((1,), (1,)), ((), ())),
        preferred_element_type=jnp.float32,
    )

    # Stage the raw logits tile.  Dynamic index on the *leading* (non-tiled) dim
    # of the scratch -> plain, aligned full-vreg stores, no per-step branching.
    stage_ref[j] = logits

    def _online_update(lg):
        m_prev = m_sc[...]
        m_new = jnp.maximum(m_prev, jnp.max(lg, axis=-1, keepdims=True))
        s_sc[...] = s_sc[...] * jnp.exp(m_prev - m_new) + jnp.sum(
            jnp.exp(lg - m_new), axis=-1, keepdims=True)
        m_sc[...] = m_new

    if needs_mask:
        # Padded vocab columns exist only in the last V tile -> mask only there.
        @pl.when(j < num_v - 1)
        def _update_plain():
            _online_update(logits)

        @pl.when(j == num_v - 1)
        def _update_masked():
            col = jax.lax.broadcasted_iota(jnp.int32, logits.shape, 1)
            _online_update(jnp.where(col < valid_last, logits, -jnp.inf))
    else:
        _online_update(logits)

    @pl.when(j == num_v - 1)
    def _finalize():
        norm = m_sc[...] + jnp.log(s_sc[...])          # (tm, 1) logsumexp, f32
        # Write the whole resident slab with static, 128-aligned slices.
        for jj in range(num_v):
            o_ref[:, jj * tv:(jj + 1) * tv] = (
                stage_ref[jj] - norm).astype(o_ref.dtype)


def generator_forward(x, weight, *, n_words=None, tm=256, tv=1024,
                      mxu_dtype=None, out_dtype=jnp.float32,
                      weight_buffers=None):
    """Fused projection + log_softmax.

    x         : (batch, seq, hidden)
    weight    : (n_words, hidden) PyTorch nn.Linear layout, or an already
                padded/cast weight from prepare_generator_weight (pass n_words).
    mxu_dtype : optional cast of MXU operands (e.g. jnp.bfloat16 on v6e/v7x);
                accumulation and softmax math stay f32.
    out_dtype : output (and resident-slab) dtype; bf16 halves the VMEM slab and
                the HBM writeback (recommended on v7x).
    """
    b, s, h = x.shape
    v = int(n_words) if n_words is not None else int(weight.shape[0])
    assert weight.shape[1] == h, "weight hidden dim mismatch"
    assert weight.shape[0] >= v, "weight has fewer rows than n_words"
    m = b * s

    x_bytes = jnp.dtype(mxu_dtype if mxu_dtype is not None else x.dtype).itemsize
    w_bytes = jnp.dtype(mxu_dtype if mxu_dtype is not None else weight.dtype).itemsize
    o_bytes = jnp.dtype(out_dtype).itemsize

    # ---- tile planning -------------------------------------------------------
    tm = min(tm, _round_up(m, 8))
    tv = min(tv, _round_up(v, 128))
    # v7x megacore: keep >= 2 row tiles when there are enough rows to split.
    if m >= 256 and _cdiv(m, tm) < 2:
        tm = _round_up(_cdiv(m, 2), 8)

    def _vmem_need(tm_, tv_):
        v_pad_ = _round_up(v, tv_)
        n_v = v_pad_ // tv_
        return (2 * tm_ * h * x_bytes            # x tile, double-buffered
                + 2 * tv_ * h * w_bytes          # weight tile, double-buffered
                + 2 * tm_ * v_pad_ * o_bytes     # resident output slab, double-buffered
                + n_v * tm_ * tv_ * 4            # f32 logits staging scratch
                + 4 * tm_ * 4                    # running max / sum
                + (1 << 16))                     # slack

    vmem_cap = int(0.85 * _physical_vmem_bytes())
    while _vmem_need(tm, tv) > vmem_cap:
        if tm > 8:
            tm = max(8, _round_up(tm // 2, 8))
        elif tv > 128:
            tv = max(128, _round_up(tv // 2, 128))
        else:
            break

    m_pad = _round_up(m, tm)
    v_pad = _round_up(v, tv)
    num_m = m_pad // tm
    num_v = v_pad // tv
    needs_mask = v_pad != v
    valid_last = v - (num_v - 1) * tv

    # ---- operand preparation (no-ops when pre-padded / pre-cast) -------------
    x2 = x.reshape(m, h)
    if mxu_dtype is not None and x2.dtype != mxu_dtype:
        x2 = x2.astype(mxu_dtype)
    if m_pad != m:
        x2 = jnp.pad(x2, ((0, m_pad - m), (0, 0)))

    w = weight
    if mxu_dtype is not None and w.dtype != mxu_dtype:
        w = w.astype(mxu_dtype)
    if w.shape[0] != v_pad:
        if w.shape[0] > v:
            w = w[:v]
        w = jnp.pad(w, ((0, v_pad - w.shape[0]), (0, 0)))

    vmem_need = _vmem_need(tm, tv)
    vmem_limit = int(min(vmem_cap, max(2 * vmem_need, 32 * 2**20)))

    cost = pl.CostEstimate(
        flops=2 * m_pad * h * v_pad,
        transcendentals=m_pad * v_pad,
        # Weight is re-streamed once per M tile; x is read once; output written once.
        bytes_accessed=(num_m * v_pad * h * w_bytes
                        + m_pad * h * x_bytes
                        + m_pad * v_pad * o_bytes),
    )

    kernel = functools.partial(
        _generator_kernel, num_v=num_v, tv=tv,
        valid_last=valid_last, needs_mask=needs_mask)

    w_spec_kwargs = {}
    if weight_buffers is not None and weight_buffers != 2:
        w_spec_kwargs["pipeline_mode"] = pl.Buffered(weight_buffers)
    w_spec = pl.BlockSpec((tv, h), lambda i, j: (j, 0), **w_spec_kwargs)

    out = pl.pallas_call(
        kernel,
        out_shape=jax.ShapeDtypeStruct((m_pad, v_pad), out_dtype),
        grid_spec=pltpu.PrefetchScalarGridSpec(
            num_scalar_prefetch=0,
            grid=(num_m, num_v),                              # reduction (V) axis last
            in_specs=[
                pl.BlockSpec((tm, h), lambda i, j: (i, 0)),   # x row tile (resident over j)
                w_spec,                                       # weight vocab tile
            ],
            out_specs=pl.BlockSpec((tm, v_pad), lambda i, j: (i, 0)),
            scratch_shapes=[
                pltpu.VMEM((tm, 1), jnp.float32),             # running max
                pltpu.VMEM((tm, 1), jnp.float32),             # running sum of exp
                pltpu.VMEM((num_v, tm, tv), jnp.float32),     # staged raw logits
            ],
        ),
        compiler_params=pltpu.CompilerParams(
            dimension_semantics=("parallel", "arbitrary"),
            vmem_limit_bytes=vmem_limit,
        ),
        cost_estimate=cost,
    )(x2, w)

    if m_pad != m or v_pad != v:
        out = out[:m, :v]
    return out.reshape(b, s, v)


if __name__ == "__main__":
    # Small shapes consistent with the module; n_words chosen so vocab padding /
    # masking is exercised.
    batch, seq, hidden, n_words = 2, 7, 32, 1000

    key = jax.random.PRNGKey(0)
    kx, kw = jax.random.split(key)
    x = jax.random.normal(kx, (batch, seq, hidden), dtype=jnp.float32)
    # Deterministic stand-in for my_init.embedding_init: N(0, hidden^-0.5).
    weight = jax.random.normal(kw, (n_words, hidden), dtype=jnp.float32) * (hidden ** -0.5)

    # Reference in plain JAX.
    ref = jax.nn.log_softmax(
        x.reshape(-1, hidden) @ weight.T, axis=-1
    ).reshape(batch, seq, n_words)

    # Config 1: default tiles (single M tile, single V tile for this small vocab).
    out1 = jax.block_until_ready(generator_forward(x, weight))
    assert out1.shape == (batch, seq, n_words)
    assert jnp.allclose(out1, ref, atol=1e-4, rtol=1e-4), \
        float(jnp.max(jnp.abs(out1 - ref)))

    # Config 2: small tiles to exercise M tiling, V tiling + last-tile vocab mask,
    # the dynamic-slot logit staging, and the pre-padded (setup-time) weight path.
    w_prep = prepare_generator_weight(weight, tv=128)
    out2 = jax.block_until_ready(
        generator_forward(x, w_prep, n_words=n_words, tm=8, tv=128))
    assert out2.shape == (batch, seq, n_words)
    assert jnp.allclose(out2, ref, atol=1e-4, rtol=1e-4), \
        float(jnp.max(jnp.abs(out2 - ref)))

    print("KERNEL_OK")
</pallas_src>

<mosaic_0001>
module attributes {stable_mosaic.version = 11 : i64} {
  func.func @_generator_kernel(%arg0: i32, %arg1: i32, %arg2: memref<16x32xf32, #tpu.memory_space<vmem>>, %arg3: memref<1024x32xf32, #tpu.memory_space<vmem>>, %arg4: memref<16x1024xf32, #tpu.memory_space<vmem>>, %arg5: memref<16x1xf32, #tpu.memory_space<vmem>>, %arg6: memref<16x1xf32, #tpu.memory_space<vmem>>, %arg7: memref<1x16x1024xf32, #tpu.memory_space<vmem>>) attributes {dimension_semantics = [#tpu.dimension_semantics<parallel>, #tpu.dimension_semantics<arbitrary>], iteration_bounds = array<i64: 1, 1>, scalar_prefetch = 0 : i64, scratch_operands = 3 : i64, tpu.core_type = #tpu.core_type<tc>, window_params = [{transform_indices = @transform_0, window_bounds = array<i64: 16, 32>}, {transform_indices = @transform_1, window_bounds = array<i64: 1024, 32>}, {transform_indices = @transform_2, window_bounds = array<i64: 16, 1024>}]} {
    %c0_i32 = arith.constant 0 : i32
    %0 = arith.cmpi eq, %arg1, %c0_i32 : i32
    %1 = arith.extui %0 : i1 to i32
    %c0_i32_0 = arith.constant 0 : i32
    %2 = arith.cmpi ne, %1, %c0_i32_0 : i32
    scf.if %2 {
      %cst_12 = arith.constant 0xFF800000 : f32
      %19 = vector.broadcast %cst_12 : f32 to vector<16x1xf32>
      %c0_13 = arith.constant 0 : index
      %c0_14 = arith.constant 0 : index
      %20 = vector.load %arg5[%c0_13, %c0_14] : memref<16x1xf32, #tpu.memory_space<vmem>>, vector<16x1xf32>
      tpu.vector_store %arg5[%c0_13, %c0_14], %19 {strides = array<i32>} : memref<16x1xf32, #tpu.memory_space<vmem>>, vector<16x1xf32>,
      %cst_15 = arith.constant 0.000000e+00 : f32
      %21 = vector.broadcast %cst_15 : f32 to vector<16x1xf32>
      %c0_16 = arith.constant 0 : index
      %c0_17 = arith.constant 0 : index
      %22 = vector.load %arg6[%c0_16, %c0_17] : memref<16x1xf32, #tpu.memory_space<vmem>>, vector<16x1xf32>
      tpu.vector_store %arg6[%c0_16, %c0_17], %21 {strides = array<i32>} : memref<16x1xf32, #tpu.memory_space<vmem>>, vector<16x1xf32>,
    } else {
    }
    %c0 = arith.constant 0 : index
    %c0_1 = arith.constant 0 : index
    %3 = vector.load %arg2[%c0, %c0_1] : memref<16x32xf32, #tpu.memory_space<vmem>>, vector<16x32xf32>
    %c0_2 = arith.constant 0 : index
    %c0_3 = arith.constant 0 : index
    %4 = vector.load %arg3[%c0_2, %c0_3] : memref<1024x32xf32, #tpu.memory_space<vmem>>, vector<1024x32xf32>
    %cst = arith.constant dense<0.000000e+00> : vector<16x1024xf32>
    %5 = tpu.matmul %3, %4, %cst {dimension_numbers = #tpu.dot_dimension_numbers<[1], [1], [0], [0], [0, 0, 1, 0], [], []>} : vector<16x32xf32>, vector<1024x32xf32>, vector<16x1024xf32> -> vector<16x1024xf32>
    %6 = arith.index_cast %arg1 : i32 to index
    %c0_4 = arith.constant 0 : index
    %c0_5 = arith.constant 0 : index
    %7 = vector.load %arg7[%6, %c0_4, %c0_5] : memref<1x16x1024xf32, #tpu.memory_space<vmem>>, vector<1x16x1024xf32>
    %8 = vector.shape_cast %7 : vector<1x16x1024xf32> to vector<16x1024xf32>
    %9 = vector.shape_cast %5 : vector<16x1024xf32> to vector<1x16x1024xf32>
    tpu.vector_store %arg7[%6, %c0_4, %c0_5], %9 {strides = array<i32>} : memref<1x16x1024xf32, #tpu.memory_space<vmem>>, vector<1x16x1024xf32>,
    %c0_i32_6 = arith.constant 0 : i32
    %10 = arith.cmpi slt, %arg1, %c0_i32_6 : i32
    %11 = arith.extui %10 : i1 to i32
    %c0_i32_7 = arith.constant 0 : i32
    %12 = arith.cmpi ne, %11, %c0_i32_7 : i32
    scf.if %12 {
      %c0_12 = arith.constant 0 : index
      %c0_13 = arith.constant 0 : index
      %19 = vector.load %arg5[%c0_12, %c0_13] : memref<16x1xf32, #tpu.memory_space<vmem>>, vector<16x1xf32>
      %cst_14 = arith.constant dense<0xFF800000> : vector<16xf32>
      %20 = vector.multi_reduction <maximumf>, %5, %cst_14 [1] : vector<16x1024xf32> to vector<16xf32>
      %21 = vector.shape_cast %20 : vector<16xf32> to vector<16x1xf32>
      %22 = arith.maximumf %19, %21 : vector<16x1xf32>
      %c0_15 = arith.constant 0 : index
      %c0_16 = arith.constant 0 : index
      %23 = vector.load %arg6[%c0_15, %c0_16] : memref<16x1xf32, #tpu.memory_space<vmem>>, vector<16x1xf32>
      %24 = arith.subf %19, %22 : vector<16x1xf32>
      %25 = math.exp %24 : vector<16x1xf32>
      %26 = arith.mulf %23, %25 : vector<16x1xf32>
      %27 = vector.broadcast %22 : vector<16x1xf32> to vector<16x1024xf32>
      %28 = arith.subf %5, %27 : vector<16x1024xf32>
      %29 = math.exp %28 : vector<16x1024xf32>
      %cst_17 = arith.constant dense<0.000000e+00> : vector<16xf32>
      %30 = vector.multi_reduction <add>, %29, %cst_17 [1] : vector<16x1024xf32> to vector<16xf32>
      %31 = vector.shape_cast %30 : vector<16xf32> to vector<16x1xf32>
      %32 = arith.addf %26, %31 : vector<16x1xf32>
      %c0_18 = arith.constant 0 : index
      %c0_19 = arith.constant 0 : index
      %33 = vector.load %arg6[%c0_18, %c0_19] : memref<16x1xf32, #tpu.memory_space<vmem>>, vector<16x1xf32>
      tpu.vector_store %arg6[%c0_18, %c0_19], %32 {strides = array<i32>} : memref<16x1xf32, #tpu.memory_space<vmem>>, vector<16x1xf32>,
      %c0_20 = arith.constant 0 : index
      %c0_21 = arith.constant 0 : index
      %34 = vector.load %arg5[%c0_20, %c0_21] : memref<16x1xf32, #tpu.memory_space<vmem>>, vector<16x1xf32>
      tpu.vector_store %arg5[%c0_20, %c0_21], %22 {strides = array<i32>} : memref<16x1xf32, #tpu.memory_space<vmem>>, vector<16x1xf32>,
    } else {
    }
    %c0_i32_8 = arith.constant 0 : i32
    %13 = arith.cmpi eq, %arg1, %c0_i32_8 : i32
    %14 = arith.extui %13 : i1 to i32
    %c0_i32_9 = arith.constant 0 : i32
    %15 = arith.cmpi ne, %14, %c0_i32_9 : i32
    scf.if %15 {
      %19 = tpu.iota {dimensions = array<i32: 1>} : vector<16x1024xi32>
      %c1000_i32 = arith.constant 1000 : i32
      %20 = vector.broadcast %c1000_i32 : i32 to vector<16x1024xi32>
      %21 = arith.cmpi slt, %19, %20 : vector<16x1024xi32>
      %cst_12 = arith.constant 0xFF800000 : f32
      %22 = vector.broadcast %cst_12 : f32 to vector<16x1024xf32>
      %23 = arith.select %21, %5, %22 : vector<16x1024xi1>, vector<16x1024xf32>
      %c0_13 = arith.constant 0 : index
      %c0_14 = arith.constant 0 : index
      %24 = vector.load %arg5[%c0_13, %c0_14] : memref<16x1xf32, #tpu.memory_space<vmem>>, vector<16x1xf32>
      %cst_15 = arith.constant dense<0xFF800000> : vector<16xf32>
      %25 = vector.multi_reduction <maximumf>, %23, %cst_15 [1] : vector<16x1024xf32> to vector<16xf32>
      %26 = vector.shape_cast %25 : vector<16xf32> to vector<16x1xf32>
      %27 = arith.maximumf %24, %26 : vector<16x1xf32>
      %c0_16 = arith.constant 0 : index
      %c0_17 = arith.constant 0 : index
      %28 = vector.load %arg6[%c0_16, %c0_17] : memref<16x1xf32, #tpu.memory_space<vmem>>, vector<16x1xf32>
      %29 = arith.subf %24, %27 : vector<16x1xf32>
      %30 = math.exp %29 : vector<16x1xf32>
      %31 = arith.mulf %28, %30 : vector<16x1xf32>
      %32 = vector.broadcast %27 : vector<16x1xf32> to vector<16x1024xf32>
      %33 = arith.subf %23, %32 : vector<16x1024xf32>
      %34 = math.exp %33 : vector<16x1024xf32>
      %cst_18 = arith.constant dense<0.000000e+00> : vector<16xf32>
      %35 = vector.multi_reduction <add>, %34, %cst_18 [1] : vector<16x1024xf32> to vector<16xf32>
      %36 = vector.shape_cast %35 : vector<16xf32> to vector<16x1xf32>
      %37 = arith.addf %31, %36 : vector<16x1xf32>
      %c0_19 = arith.constant 0 : index
      %c0_20 = arith.constant 0 : index
      %38 = vector.load %arg6[%c0_19, %c0_20] : memref<16x1xf32, #tpu.memory_space<vmem>>, vector<16x1xf32>
      tpu.vector_store %arg6[%c0_19, %c0_20], %37 {strides = array<i32>} : memref<16x1xf32, #tpu.memory_space<vmem>>, vector<16x1xf32>,
      %c0_21 = arith.constant 0 : index
      %c0_22 = arith.constant 0 : index
      %39 = vector.load %arg5[%c0_21, %c0_22] : memref<16x1xf32, #tpu.memory_space<vmem>>, vector<16x1xf32>
      tpu.vector_store %arg5[%c0_21, %c0_22], %27 {strides = array<i32>} : memref<16x1xf32, #tpu.memory_space<vmem>>, vector<16x1xf32>,
    } else {
    }
    %c0_i32_10 = arith.constant 0 : i32
    %16 = arith.cmpi eq, %arg1, %c0_i32_10 : i32
    %17 = arith.extui %16 : i1 to i32
    %c0_i32_11 = arith.constant 0 : i32
    %18 = arith.cmpi ne, %17, %c0_i32_11 : i32
    scf.if %18 {
      %c0_12 = arith.constant 0 : index
      %c0_13 = arith.constant 0 : index
      %19 = vector.load %arg5[%c0_12, %c0_13] : memref<16x1xf32, #tpu.memory_space<vmem>>, vector<16x1xf32>
      %c0_14 = arith.constant 0 : index
      %c0_15 = arith.constant 0 : index
      %20 = vector.load %arg6[%c0_14, %c0_15] : memref<16x1xf32, #tpu.memory_space<vmem>>, vector<16x1xf32>
      %21 = math.log %20 : vector<16x1xf32>
      %22 = arith.addf %19, %21 : vector<16x1xf32>
      %c0_16 = arith.constant 0 : index
      %c0_17 = arith.constant 0 : index
      %c0_18 = arith.constant 0 : index
      %23 = vector.load %arg7[%c0_16, %c0_17, %c0_18] : memref<1x16x1024xf32, #tpu.memory_space<vmem>>, vector<1x16x1024xf32>
      %24 = vector.shape_cast %23 : vector<1x16x1024xf32> to vector<16x1024xf32>
      %25 = vector.broadcast %22 : vector<16x1xf32> to vector<16x1024xf32>
      %26 = arith.subf %24, %25 : vector<16x1024xf32>
      %c0_19 = arith.constant 0 : index
      %c0_20 = arith.constant 0 : index
      %27 = vector.load %arg4[%c0_19, %c0_20] : memref<16x1024xf32, #tpu.memory_space<vmem>>, vector<16x1024xf32>
      tpu.vector_store %arg4[%c0_19, %c0_20], %26 {strides = array<i32>} : memref<16x1024xf32, #tpu.memory_space<vmem>>, vector<16x1024xf32>,
    } else {
    }
    return
  }
  func.func @transform_0(%arg0: i32, %arg1: i32) -> (i32, i32) {
    %c0_i32 = arith.constant 0 : i32
    %c0_i32_0 = arith.constant 0 : i32
    return %arg0, %c0_i32 : i32, i32
  }
  func.func @transform_1(%arg0: i32, %arg1: i32) -> (i32, i32) {
    %c0_i32 = arith.constant 0 : i32
    %c0_i32_0 = arith.constant 0 : i32
    return %arg1, %c0_i32 : i32, i32
  }
  func.func @transform_2(%arg0: i32, %arg1: i32) -> (i32, i32) {
    %c0_i32 = arith.constant 0 : i32
    %c0_i32_0 = arith.constant 0 : i32
    return %arg0, %c0_i32 : i32, i32
  }
}

</mosaic_0001>

<bundles_post_ra>
// kernel: tpu_custom_call.1
= control target key start
LH: loop header
LB: loop body
LE: loop exit
PB: predicated region body
PF: predicated region fallthrough
CT: control target
= control target key end

     0   :  { %vm151_vm0 = vcmask 261120   ;;  %s2271_s0 = inlined_call_operand.vmem [shape: f32[16,32], index: 0, kind: input, shape index: {}]   ;;  %s2272_s1 = inlined_call_operand.vmem [shape: f32[1024,32], index: 1, kind: input, shape index: {}]   ;;  %s2273_s2 = inlined_call_operand.hbm [shape: f32[16,1024], index: 2, kind: output, shape index: {}]  }
   0x1   :  { %v54_v0 = vld [vmem:[%s2272_s1 + $0xf8] sm:$0xff]  ;;  %v53_v4 = vld [vmem:[%s2272_s1 + $0xf0] sm:$0xff]  ;;  %v52_v8 = vld [vmem:[%s2272_s1 + $0xe8] sm:$0xff] }
   0x2   :  { %v86_v1 = vld [vmem:[%s2272_s1 + $0x1f8] sm:$0xff]  ;;  %1359 = vmatprep.subr.msk.mxu0 %vm151_vm0, %v54_v0  ;;  %v85_v5 = vld [vmem:[%s2272_s1 + $0x1f0] sm:$0xff]  ;;  %v84_v9 = vld [vmem:[%s2272_s1 + $0x1e8] sm:$0xff] }
   0x3   :  { %v38_v2 = vld [vmem:[%s2272_s1 + $0x78] sm:$0xff]  ;;  %1395 = vmatprep.subr.msk.mxu1 %vm151_vm0, %v86_v1  ;;  %v37_v6 = vld [vmem:[%s2272_s1 + $0x70] sm:$0xff]  ;;  %v36_v10 = vld [vmem:[%s2272_s1 + $0x68] sm:$0xff] }
   0x4   :  { %v70_v3 = vld [vmem:[%s2272_s1 + $0x178] sm:$0xff]  ;;  %1360 = vmatpush3.xpose.msk.msra.mxu0 %vm151_vm0, %v38_v2  ;;  %v69_v7 = vld [vmem:[%s2272_s1 + $0x170] sm:$0xff]  ;;  %v68_v11 = vld [vmem:[%s2272_s1 + $0x168] sm:$0xff] }
   0x5   :  { %1396 = vmatpush3.xpose.msk.msra.mxu1 %vm151_vm0, %v70_v3  ;;  %1361 = vmatprep.subr.msk.mxu0 %vm151_vm0, %v53_v4  ;;  %v51_v12 = vld [vmem:[%s2272_s1 + $0xe0] sm:$0xff]  ;;  %v50_v16 = vld [vmem:[%s2272_s1 + $0xd8] sm:$0xff]  ;;  %v49_v20 = vld [vmem:[%s2272_s1 + $0xd0] sm:$0xff] }
   0x6   :  { %1397 = vmatprep.subr.msk.mxu1 %vm151_vm0, %v85_v5  ;;  %v83_v13 = vld [vmem:[%s2272_s1 + $0x1e0] sm:$0xff]  ;;  %v82_v17 = vld [vmem:[%s2272_s1 + $0x1d8] sm:$0xff]  ;;  %v81_v21 = vld [vmem:[%s2272_s1 + $0x1d0] sm:$0xff] }
   0x7   :  { %v35_v14 = vld [vmem:[%s2272_s1 + $0x60] sm:$0xff]  ;;  %v34_v18 = vld [vmem:[%s2272_s1 + $0x58] sm:$0xff]  ;;  %v33_v22 = vld [vmem:[%s2272_s1 + $0x50] sm:$0xff] }
   0x8   :  { %1362 = vmatpush3.xpose.msk.msra.mxu0 %vm151_vm0, %v37_v6  ;;  %v67_v15 = vld [vmem:[%s2272_s1 + $0x160] sm:$0xff]  ;;  %v66_v19 = vld [vmem:[%s2272_s1 + $0x158] sm:$0xff]  ;;  %v65_v23 = vld [vmem:[%s2272_s1 + $0x150] sm:$0xff] }
   0x9   :  { %1398 = vmatpush3.xpose.msk.msra.mxu1 %vm151_vm0, %v69_v7  ;;  %1363 = vmatprep.subr.msk.mxu0 %vm151_vm0, %v52_v8  ;;  %v48_v24 = vld [vmem:[%s2272_s1 + $0xc8] sm:$0xff]  ;;  %v1697_v26 = vld [vmem:[%s2271_s0] sm:$0xff]  ;;  %v46_v33 = vld [vmem:[%s2272_s1 + $0xb8] sm:$0xff] }
   0xa   :  { %1399 = vmatprep.subr.msk.mxu1 %vm151_vm0, %v84_v9  ;;  %v80_v25 = vld [vmem:[%s2272_s1 + $0x1c8] sm:$0xff]  ;;  %v47_v29 = vld [vmem:[%s2272_s1 + $0xc0] sm:$0xff]  ;;  %1391 = vmatprep.mubr.msk.f32.mxu0 %vm151_vm0, %v1697_v26  ;;  %v78_v34 = vld [vmem:[%s2272_s1 + $0x1b8] sm:$0xff] }
   0xb   :  { %v32_v27 = vld [vmem:[%s2272_s1 + $0x48] sm:$0xff]  ;;  %v79_v30 = vld [vmem:[%s2272_s1 + $0x1c0] sm:$0xff]  ;;  %1427 = vmatprep.mubr.msk.f32.mxu1 %vm151_vm0, %v1697_v26  ;;  %v30_v35 = vld [vmem:[%s2272_s1 + $0x38] sm:$0xff] }
   0xc   :  { %1364 = vmatpush3.xpose.msk.msra.mxu0 %vm151_vm0, %v36_v10  ;;  %v64_v28 = vld [vmem:[%s2272_s1 + $0x148] sm:$0xff]  ;;  %v31_v31 = vld [vmem:[%s2272_s1 + $0x40] sm:$0xff]  ;;  %v62_v36 = vld [vmem:[%s2272_s1 + $0x138] sm:$0xff] }
   0xd   :  { %1400 = vmatpush3.xpose.msk.msra.mxu1 %vm151_vm0, %v68_v11  ;;  %1365 = vmatprep.subr.msk.mxu0 %vm151_vm0, %v51_v12  ;;  %v63_v32 = vld [vmem:[%s2272_s1 + $0x140] sm:$0xff]  ;;  %v45_v37 = vld [vmem:[%s2272_s1 + $0xb0] sm:$0xff]  ;;  %v44_v41 = vld [vmem:[%s2272_s1 + $0xa8] sm:$0xff] }
   0xe   :  { %1401 = vmatprep.subr.msk.mxu1 %vm151_vm0, %v83_v13  ;;  %v77_v38 = vld [vmem:[%s2272_s1 + $0x1b0] sm:$0xff]  ;;  %v76_v42 = vld [vmem:[%s2272_s1 + $0x1a8] sm:$0xff]  ;;  %v43_v45 = vld [vmem:[%s2272_s1 + $0xa0] sm:$0xff] }
   0xf   :  { %v29_v39 = vld [vmem:[%s2272_s1 + $0x30] sm:$0xff]  ;;  %v28_v43 = vld [vmem:[%s2272_s1 + $0x28] sm:$0xff]  ;;  %v75_v46 = vld [vmem:[%s2272_s1 + $0x1a0] sm:$0xff] }
  0x10   :  { %1366 = vmatpush3.xpose.msk.msra.mxu0 %vm151_vm0, %v35_v14  ;;  %v61_v40 = vld [vmem:[%s2272_s1 + $0x130] sm:$0xff]  ;;  %v60_v44 = vld [vmem:[%s2272_s1 + $0x128] sm:$0xff]  ;;  %v27_v47 = vld [vmem:[%s2272_s1 + $0x20] sm:$0xff] }
  0x11   :  { %1402 = vmatpush3.xpose.msk.msra.mxu1 %vm151_vm0, %v67_v15  ;;  %1367 = vmatprep.subr.msk.mxu0 %vm151_vm0, %v50_v16  ;;  %v59_v48 = vld [vmem:[%s2272_s1 + $0x120] sm:$0xff] }
  0x12   :  { %1403 = vmatprep.subr.msk.mxu1 %vm151_vm0, %v82_v17 }
  0x14   :  { %1368 = vmatpush3.xpose.msk.msra.mxu0 %vm151_vm0, %v34_v18 }
  0x15   :  { %1404 = vmatpush3.xpose.msk.msra.mxu1 %vm151_vm0, %v66_v19  ;;  %1369 = vmatprep.subr.msk.mxu0 %vm151_vm0, %v49_v20 }
  0x16   :  { %1405 = vmatprep.subr.msk.mxu1 %vm151_vm0, %v81_v21 }
  0x18   :  { %1370 = vmatpush3.xpose.msk.msra.mxu0 %vm151_vm0, %v33_v22 }
  0x19   :  { %1406 = vmatpush3.xpose.msk.msra.mxu1 %vm151_vm0, %v65_v23  ;;  %1371 = vmatprep.subr.msk.mxu0 %vm151_vm0, %v48_v24 }
  0x1a   :  { %1407 = vmatprep.subr.msk.mxu1 %vm151_vm0, %v80_v25 }
  0x1c   :  { %1372 = vmatpush3.xpose.msk.msra.mxu0 %vm151_vm0, %v32_v27 }
  0x1d   :  { %1408 = vmatpush3.xpose.msk.msra.mxu1 %vm151_vm0, %v64_v28  ;;  %1373 = vmatprep.subr.msk.mxu0 %vm151_vm0, %v47_v29 }
  0x1e   :  { %1409 = vmatprep.subr.msk.mxu1 %vm151_vm0, %v79_v30 }
  0x20   :  { %1374 = vmatpush3.xpose.msk.msra.mxu0 %vm151_vm0, %v31_v31 }
  0x21   :  { %1410 = vmatpush3.xpose.msk.msra.mxu1 %vm151_vm0, %v63_v32  ;;  %1375 = vmatprep.subr.msk.mxu0 %vm151_vm0, %v46_v33 }
  0x22   :  { %1411 = vmatprep.subr.msk.mxu1 %vm151_vm0, %v78_v34 }
  0x24   :  { %1376 = vmatpush3.xpose.msk.msra.mxu0 %vm151_vm0, %v30_v35 }
  0x25   :  { %1412 = vmatpush3.xpose.msk.msra.mxu1 %vm151_vm0, %v62_v36  ;;  %1377 = vmatprep.subr.msk.mxu0 %vm151_vm0, %v45_v37 }
  0x26   :  { %1413 = vmatprep.subr.msk.mxu1 %vm151_vm0, %v77_v38 }
  0x28   :  { %1378 = vmatpush3.xpose.msk.msra.mxu0 %vm151_vm0, %v29_v39 }
  0x29   :  { %1414 = vmatpush3.xpose.msk.msra.mxu1 %vm151_vm0, %v61_v40  ;;  %1379 = vmatprep.subr.msk.mxu0 %vm151_vm0, %v44_v41 }
  0x2a   :  { %1415 = vmatprep.subr.msk.mxu1 %vm151_vm0, %v76_v42 }
  0x2c   :  { %1380 = vmatpush3.xpose.msk.msra.mxu0 %vm151_vm0, %v28_v43 }
  0x2d   :  { %1416 = vmatpush3.xpose.msk.msra.mxu1 %vm151_vm0, %v60_v44  ;;  %1381 = vmatprep.subr.msk.mxu0 %vm151_vm0, %v43_v45 }
  0x2e   :  { %1417 = vmatprep.subr.msk.mxu1 %vm151_vm0, %v75_v46 }
  0x2f   :  { %7 = vsyncpa [#allocation6], 0  ;;  %v42_v49 = vld [vmem:[%s2272_s1 + $0x98] sm:$0xff]  ;;  %v41_v53 = vld [vmem:[%s2272_s1 + $0x90] sm:$0xff]  ;;  %vm16_vm2 = vcmask 7168  }
  0x30   :  { %v74_v50 = vld [vmem:[%s2272_s1 + $0x198] sm:$0xff]  ;;  %1382 = vmatpush3.xpose.msk.msra.mxu0 %vm151_vm0, %v27_v47  ;;  %v73_v54 = vld [vmem:[%s2272_s1 + $0x190] sm:$0xff]  ;;  %v40_v57 = vld [vmem:[%s2272_s1 + $0x88] sm:$0xff] }
  0x31   :  { %1418 = vmatpush3.xpose.msk.msra.mxu1 %vm151_vm0, %v59_v48  ;;  %1383 = vmatprep.subr.msk.mxu0 %vm151_vm0, %v42_v49  ;;  %v26_v51 = vld [vmem:[%s2272_s1 + $0x18] sm:$0xff]  ;;  %v25_v55 = vld [vmem:[%s2272_s1 + $0x10] sm:$0xff]  ;;  %v72_v58 = vld [vmem:[%s2272_s1 + $0x188] sm:$0xff] }
  0x32   :  { %1419 = vmatprep.subr.msk.mxu1 %vm151_vm0, %v74_v50  ;;  %v58_v52 = vld [vmem:[%s2272_s1 + $0x118] sm:$0xff]  ;;  %v57_v56 = vld [vmem:[%s2272_s1 + $0x110] sm:$0xff]  ;;  %v24_v59 = vld [vmem:[%s2272_s1 + $0x8] sm:$0xff] }
  0x33   :  { %v56_v60 = vld [vmem:[%s2272_s1 + $0x108] sm:$0xff]  ;;  %v39_v61 = vld [vmem:[%s2272_s1 + $0x80] sm:$0xff]  ;;  %v118_v1 = vld [vmem:[%s2272_s1 + $0x2f8] sm:$0xff] }
  0x34   :  { %1384 = vmatpush3.xpose.msk.msra.mxu0 %vm151_vm0, %v26_v51  ;;  %v71_v62 = vld [vmem:[%s2272_s1 + $0x180] sm:$0xff]  ;;  %v150_v2 = vld [vmem:[%s2272_s1 + $0x3f8] sm:$0xff]  ;;  %v117_v5 = vld [vmem:[%s2272_s1 + $0x2f0] sm:$0xff] }
  0x35   :  { %1420 = vmatpush3.xpose.msk.msra.mxu1 %vm151_vm0, %v58_v52  ;;  %1385 = vmatprep.subr.msk.mxu0 %vm151_vm0, %v41_v53  ;;  %v23_v63 = vld [vmem:[%s2272_s1] sm:$0xff]  ;;  %v102_v3 = vld [vmem:[%s2272_s1 + $0x278] sm:$0xff]  ;;  %v149_v6 = vld [vmem:[%s2272_s1 + $0x3f0] sm:$0xff] }
  0x36   :  { %1421 = vmatprep.subr.msk.mxu1 %vm151_vm0, %v73_v54  ;;  %v55_v0 = vld [vmem:[%s2272_s1 + $0x100] sm:$0xff]  ;;  %v134_v4 = vld [vmem:[%s2272_s1 + $0x378] sm:$0xff]  ;;  %v1886_v7 = vld [vmem:[%s2271_s0 + $0x8] sm:$0xff] }
  0x37   :  { %v101_v8 = vld [vmem:[%s2272_s1 + $0x270] sm:$0xff]  ;;  %v116_v10 = vld [vmem:[%s2272_s1 + $0x2e8] sm:$0xff]  ;;  %v115_v14 = vld [vmem:[%s2272_s1 + $0x2e0] sm:$0xff] }
  0x38   :  { %1386 = vmatpush3.xpose.msk.msra.mxu0 %vm151_vm0, %v25_v55  ;;  %v133_v9 = vld [vmem:[%s2272_s1 + $0x370] sm:$0xff]  ;;  %v148_v11 = vld [vmem:[%s2272_s1 + $0x3e8] sm:$0xff]  ;;  %v147_v15 = vld [vmem:[%s2272_s1 + $0x3e0] sm:$0xff] }
  0x39   :  { %1422 = vmatpush3.xpose.msk.msra.mxu1 %vm151_vm0, %v57_v56  ;;  %1387 = vmatprep.subr.msk.mxu0 %vm151_vm0, %v40_v57  ;;  %v100_v12 = vld [vmem:[%s2272_s1 + $0x268] sm:$0xff]  ;;  %v99_v16 = vld [vmem:[%s2272_s1 + $0x260] sm:$0xff]  ;;  %v114_v18 = vld [vmem:[%s2272_s1 + $0x2d8] sm:$0xff] }
  0x3a   :  { %1423 = vmatprep.subr.msk.mxu1 %vm151_vm0, %v72_v58  ;;  %v132_v13 = vld [vmem:[%s2272_s1 + $0x368] sm:$0xff]  ;;  %v131_v17 = vld [vmem:[%s2272_s1 + $0x360] sm:$0xff]  ;;  %v146_v19 = vld [vmem:[%s2272_s1 + $0x3d8] sm:$0xff] }
  0x3b   :  { %v98_v20 = vld [vmem:[%s2272_s1 + $0x258] sm:$0xff]  ;;  %v113_v22 = vld [vmem:[%s2272_s1 + $0x2d0] sm:$0xff]  ;;  %v112_v27 = vld [vmem:[%s2272_s1 + $0x2c8] sm:$0xff] }
  0x3c   :  { %1388 = vmatpush3.xpose.msk.msra.mxu0 %vm151_vm0, %v24_v59  ;;  %v130_v21 = vld [vmem:[%s2272_s1 + $0x358] sm:$0xff]  ;;  %v145_v23 = vld [vmem:[%s2272_s1 + $0x3d0] sm:$0xff]  ;;  %v144_v28 = vld [vmem:[%s2272_s1 + $0x3c8] sm:$0xff] }
  0x3d   :  { %1424 = vmatpush3.xpose.msk.msra.mxu1 %vm151_vm0, %v56_v60  ;;  %1389 = vmatprep.subr.msk.mxu0 %vm151_vm0, %v39_v61  ;;  %v97_v24 = vld [vmem:[%s2272_s1 + $0x250] sm:$0xff]  ;;  %v96_v29 = vld [vmem:[%s2272_s1 + $0x248] sm:$0xff]  ;;  %v111_v31 = vld [vmem:[%s2272_s1 + $0x2c0] sm:$0xff] }
  0x3e   :  { %1425 = vmatprep.subr.msk.mxu1 %vm151_vm0, %v71_v62  ;;  %v129_v25 = vld [vmem:[%s2272_s1 + $0x350] sm:$0xff]  ;;  %v128_v30 = vld [vmem:[%s2272_s1 + $0x348] sm:$0xff]  ;;  %v143_v32 = vld [vmem:[%s2272_s1 + $0x3c0] sm:$0xff] }
  0x3f   :  { %v95_v33 = vld [vmem:[%s2272_s1 + $0x240] sm:$0xff]  ;;  %v110_v35 = vld [vmem:[%s2272_s1 + $0x2b8] sm:$0xff]  ;;  %v109_v39 = vld [vmem:[%s2272_s1 + $0x2b0] sm:$0xff] }
  0x40   :  { %1390 = vmatpush3.xpose.msk.msra.mxu0 %vm151_vm0, %v23_v63  ;;  %v127_v34 = vld [vmem:[%s2272_s1 + $0x340] sm:$0xff]  ;;  %v142_v36 = vld [vmem:[%s2272_s1 + $0x3b8] sm:$0xff]  ;;  %v141_v40 = vld [vmem:[%s2272_s1 + $0x3b0] sm:$0xff] }
  0x41   :  { %1426 = vmatpush3.xpose.msk.msra.mxu1 %vm151_vm0, %v55_v0  ;;  %1431 = vmatprep.subr.msk.mxu0 %vm151_vm0, %v118_v1  ;;  %v94_v37 = vld [vmem:[%s2272_s1 + $0x238] sm:$0xff]  ;;  %v93_v41 = vld [vmem:[%s2272_s1 + $0x230] sm:$0xff]  ;;  %v108_v43 = vld [vmem:[%s2272_s1 + $0x2a8] sm:$0xff] }
  0x42   :  { %1467 = vmatprep.subr.msk.mxu1 %vm151_vm0, %v150_v2  ;;  %v126_v38 = vld [vmem:[%s2272_s1 + $0x338] sm:$0xff]  ;;  %v125_v42 = vld [vmem:[%s2272_s1 + $0x330] sm:$0xff]  ;;  %v140_v44 = vld [vmem:[%s2272_s1 + $0x3a8] sm:$0xff] }
  0x43   :  { %1392 = vmatmul.mubr.msk.f32.vlgmr.msra.gmra.mxu0 %vm151_vm0, %v1697_v26  ;;  %v92_v45 = vld [vmem:[%s2272_s1 + $0x228] sm:$0xff]  ;;  %v107_v47 = vld [vmem:[%s2272_s1 + $0x2a0] sm:$0xff]  ;;  %v106_v51 = vld [vmem:[%s2272_s1 + $0x298] sm:$0xff] }
  0x44   :  { %1428 = vmatmul.mubr.msk.f32.vlgmr.msra.gmra.mxu1 %vm151_vm0, %v1697_v26  ;;  %1432 = vmatpush3.xpose.msk.msra.mxu0 %vm151_vm0, %v102_v3  ;;  %v124_v46 = vld [vmem:[%s2272_s1 + $0x328] sm:$0xff]  ;;  %v139_v48 = vld [vmem:[%s2272_s1 + $0x3a0] sm:$0xff]  ;;  %v138_v52 = vld [vmem:[%s2272_s1 + $0x398] sm:$0xff] }
  0x45   :  { %1468 = vmatpush3.xpose.msk.msra.mxu1 %vm151_vm0, %v134_v4  ;;  %1433 = vmatprep.subr.msk.mxu0 %vm151_vm0, %v117_v5  ;;  %v91_v49 = vld [vmem:[%s2272_s1 + $0x220] sm:$0xff]  ;;  %v90_v53 = vld [vmem:[%s2272_s1 + $0x218] sm:$0xff]  ;;  %v105_v55 = vld [vmem:[%s2272_s1 + $0x290] sm:$0xff]  ;;  %v991_v5 = vlaneseq }
  0x46   :  { %1469 = vmatprep.subr.msk.mxu1 %vm151_vm0, %v149_v6  ;;  %1393 = vmatprep.mubr.msk.f32.mxu0 %vm151_vm0, %v1886_v7  ;;  %v123_v50 = vld [vmem:[%s2272_s1 + $0x320] sm:$0xff]  ;;  %v122_v54 = vld [vmem:[%s2272_s1 + $0x318] sm:$0xff]  ;;  %v137_v56 = vld [vmem:[%s2272_s1 + $0x390] sm:$0xff] }
  0x47   :  { %1429 = vmatprep.mubr.msk.f32.mxu1 %vm151_vm0, %v1886_v7  ;;  %1394 = vmatmul.mubr.msk.f32.gmra.mxu0 %vm151_vm0, %v1886_v7  ;;  %v89_v57 = vld [vmem:[%s2272_s1 + $0x210] sm:$0xff]  ;;  %v104_v59 = vld [vmem:[%s2272_s1 + $0x288] sm:$0xff]  ;;  %v103_v63 = vld [vmem:[%s2272_s1 + $0x280] sm:$0xff] }
  0x48   :  { %1430 = vmatmul.mubr.msk.f32.gmra.mxu1 %vm151_vm0, %v1886_v7  ;;  %1434 = vmatpush3.xpose.msk.msra.mxu0 %vm151_vm0, %v101_v8  ;;  %v121_v58 = vld [vmem:[%s2272_s1 + $0x310] sm:$0xff]  ;;  %v136_v60 = vld [vmem:[%s2272_s1 + $0x388] sm:$0xff]  ;;  %v135_v0 = vld [vmem:[%s2272_s1 + $0x380] sm:$0xff]  ;;  %v992_v8 = vand.u32 127, %v991_v5 }
  0x49   :  { %1470 = vmatpush3.xpose.msk.msra.mxu1 %vm151_vm0, %v133_v9  ;;  %1435 = vmatprep.subr.msk.mxu0 %vm151_vm0, %v116_v10  ;;  %v88_v61 = vld [vmem:[%s2272_s1 + $0x208] sm:$0xff]  ;;  %v87_v1 = vld [vmem:[%s2272_s1 + $0x200] sm:$0xff] }
  0x4a   :  { %1471 = vmatprep.subr.msk.mxu1 %vm151_vm0, %v148_v11  ;;  %1463 = vmatprep.mubr.msk.f32.mxu0 %vm151_vm0, %v1697_v26  ;;  %v120_v62 = vld [vmem:[%s2272_s1 + $0x308] sm:$0xff]  ;;  %v119_v2 = vld [vmem:[%s2272_s1 + $0x300] sm:$0xff]  ;;  %v999_v11 = vadd.s32 896, %v992_v8  ;;  %s1576_s1 = smov [#allocation5]  }
  0x4b   :  { %1499 = vmatprep.mubr.msk.f32.mxu1 %vm151_vm0, %v1697_v26  ;;  %s1212_s13 = sshll.u32 %s1576_s1, 4  ;;  %s1213_s13 = int_to_ptr.vmem [resolvable:$true] %s1212_s13 }
  0x4c   :  { %1436 = vmatpush3.xpose.msk.msra.mxu0 %vm151_vm0, %v100_v12  ;;  %vm1007_vm1 = vcmp.lt.s32.totalorder %v999_v11, 1000  ;;  %s1551_s14 = scalar_lea.vmem %s1213_s13, 2048  ;;  %p1556_p1 = scmp.lt.s32.totalorder %s1213_s13, %s1213_s13 }
  0x4d   :  { %1472 = vmatpush3.xpose.msk.msra.mxu1 %vm151_vm0, %v132_v13  ;;  %1437 = vmatprep.subr.msk.mxu0 %vm151_vm0, %v115_v14  ;;  %p1552_p0 = scmp.ne.s32.totalorder %s1213_s13, %s1551_s14  ;;  %p1557_p2 = scmp.lt.s32.totalorder %s1551_s14, %s1551_s14 }
  0x4e   :  { %1473 = vmatprep.subr.msk.mxu1 %vm151_vm0, %v147_v15 }
  0x4f   :  { %p1558_p3 = por %p1557_p2, %p1556_p1 }
  0x50   :  { %1438 = vmatpush3.xpose.msk.msra.mxu0 %vm151_vm0, %v99_v16 }
  0x51   :  { %1474 = vmatpush3.xpose.msk.msra.mxu1 %vm151_vm0, %v131_v17  ;;  %1439 = vmatprep.subr.msk.mxu0 %vm151_vm0, %v114_v18  ;;  %p1559_p4 = pnand %p1558_p3, %p1552_p0 }
  0x52   :  { %1475 = vmatprep.subr.msk.mxu1 %vm151_vm0, %v146_v19 }
  0x54   :  { %1440 = vmatpush3.xpose.msk.msra.mxu0 %vm151_vm0, %v98_v20 }
  0x55   :  { %1476 = vmatpush3.xpose.msk.msra.mxu1 %vm151_vm0, %v130_v21  ;;  %1441 = vmatprep.subr.msk.mxu0 %vm151_vm0, %v113_v22 }
  0x56   :  { %1477 = vmatprep.subr.msk.mxu1 %vm151_vm0, %v145_v23 }
  0x58   :  { %1442 = vmatpush3.xpose.msk.msra.mxu0 %vm151_vm0, %v97_v24 }
  0x59   :  { %1478 = vmatpush3.xpose.msk.msra.mxu1 %vm151_vm0, %v129_v25  ;;  %1443 = vmatprep.subr.msk.mxu0 %vm151_vm0, %v112_v27 }
  0x5a   :  { %1479 = vmatprep.subr.msk.mxu1 %vm151_vm0, %v144_v28 }
  0x5c   :  { %1444 = vmatpush3.xpose.msk.msra.mxu0 %vm151_vm0, %v96_v29 }
  0x5d   :  { %1480 = vmatpush3.xpose.msk.msra.mxu1 %vm151_vm0, %v128_v30  ;;  %1445 = vmatprep.subr.msk.mxu0 %vm151_vm0, %v111_v31 }
  0x5e   :  { %1481 = vmatprep.subr.msk.mxu1 %vm151_vm0, %v143_v32 }
  0x60   :  { %1446 = vmatpush3.xpose.msk.msra.mxu0 %vm151_vm0, %v95_v33 }
  0x61   :  { %1482 = vmatpush3.xpose.msk.msra.mxu1 %vm151_vm0, %v127_v34  ;;  %1447 = vmatprep.subr.msk.mxu0 %vm151_vm0, %v110_v35 }
  0x62   :  { %1483 = vmatprep.subr.msk.mxu1 %vm151_vm0, %v142_v36 }
  0x64   :  { %1448 = vmatpush3.xpose.msk.msra.mxu0 %vm151_vm0, %v94_v37 }
  0x65   :  { %1484 = vmatpush3.xpose.msk.msra.mxu1 %vm151_vm0, %v126_v38  ;;  %1449 = vmatprep.subr.msk.mxu0 %vm151_vm0, %v109_v39  ;;  %v1573_v38 = vmov -inf   ;;  %v1574_v39 = vmov 0  }
  0x66   :  { %1485 = vmatprep.subr.msk.mxu1 %vm151_vm0, %v141_v40  ;;  %17 = vst.msk [vmem:[#allocation2] sm:$0xff] %vm16_vm2, %v1573_v38  ;;  %18 = vst.msk [vmem:[#allocation2 + $0x8] sm:$0xff] %vm16_vm2, %v1573_v38  ;;  %1509 = vset.pattern.permute.xlu1 %v1574_v39  ;;  %v1575_v40 = vmov 0.0  }
  0x67   :  { %1510 = vset.pattern.permute.xlu0 %v1574_v39  ;;  %19 = vst.msk [vmem:[#allocation3] sm:$0xff] %vm16_vm2, %v1575_v40  ;;  %20 = vst.msk [vmem:[#allocation3 + $0x8] sm:$0xff] %vm16_vm2, %v1575_v40 }
  0x68   :  { %1450 = vmatpush3.xpose.msk.msra.mxu0 %vm151_vm0, %v93_v41 }
  0x69   :  { %1486 = vmatpush3.xpose.msk.msra.mxu1 %vm151_vm0, %v125_v42  ;;  %1451 = vmatprep.subr.msk.mxu0 %vm151_vm0, %v108_v43 }
  0x6a   :  { %1487 = vmatprep.subr.msk.mxu1 %vm151_vm0, %v140_v44 }
  0x6c   :  { %1452 = vmatpush3.xpose.msk.msra.mxu0 %vm151_vm0, %v92_v45 }
  0x6d   :  { %1488 = vmatpush3.xpose.msk.msra.mxu1 %vm151_vm0, %v124_v46  ;;  %1453 = vmatprep.subr.msk.mxu0 %vm151_vm0, %v107_v47  ;;  %v2208_v41 = vld [vmem:[#allocation2] sm:$0xff]  ;;  %v2213_v44 = vld [vmem:[#allocation2 + $0x8] sm:$0xff] }
  0x6e   :  { %1489 = vmatprep.subr.msk.mxu1 %vm151_vm0, %v139_v48 }
  0x70   :  { %1454 = vmatpush3.xpose.msk.msra.mxu0 %vm151_vm0, %v91_v49 }
  0x71   :  { %1490 = vmatpush3.xpose.msk.msra.mxu1 %vm151_vm0, %v123_v50  ;;  %1455 = vmatprep.subr.msk.mxu0 %vm151_vm0, %v106_v51 }
  0x72   :  { %1491 = vmatprep.subr.msk.mxu1 %vm151_vm0, %v138_v52 }
  0x74   :  { %1456 = vmatpush3.xpose.msk.msra.mxu0 %vm151_vm0, %v90_v53 }
  0x75   :  { %1492 = vmatpush3.xpose.msk.msra.mxu1 %vm151_vm0, %v122_v54  ;;  %1457 = vmatprep.subr.msk.mxu0 %vm151_vm0, %v105_v55 }
  0x76   :  { %1493 = vmatprep.subr.msk.mxu1 %vm151_vm0, %v137_v56 }
  0x78   :  { %1458 = vmatpush3.xpose.msk.msra.mxu0 %vm151_vm0, %v89_v57 }
  0x79   :  { %1494 = vmatpush3.xpose.msk.msra.mxu1 %vm151_vm0, %v121_v58  ;;  %1459 = vmatprep.subr.msk.mxu0 %vm151_vm0, %v104_v59 }
  0x7a   :  { %1495 = vmatprep.subr.msk.mxu1 %vm151_vm0, %v136_v60 }
  0x7c   :  { %1460 = vmatpush3.xpose.msk.msra.mxu0 %vm151_vm0, %v88_v61 }
  0x7d   :  { %1496 = vmatpush3.xpose.msk.msra.mxu1 %vm151_vm0, %v120_v62  ;;  %1461 = vmatprep.subr.msk.mxu0 %vm151_vm0, %v103_v63 }
  0x7e   :  { %1497 = vmatprep.subr.msk.mxu1 %vm151_vm0, %v135_v0 }
  0x80   :  { %1462 = vmatpush3.xpose.msk.msra.mxu0 %vm151_vm0, %v87_v1 }
  0x81   :  { %1498 = vmatpush3.xpose.msk.msra.mxu1 %vm151_vm0, %v119_v2 }
  0x83   :  { %1464 = vmatmul.mubr.msk.f32.vlgmr.msra.gmra.mxu0 %vm151_vm0, %v1697_v26 }
  0x84   :  { %1500 = vmatmul.mubr.msk.f32.vlgmr.msra.gmra.mxu1 %vm151_vm0, %v1697_v26  ;;  %1465 = vmatprep.mubr.msk.f32.mxu0 %vm151_vm0, %v1886_v7 }
  0x85   :  { %1501 = vmatprep.mubr.msk.f32.mxu1 %vm151_vm0, %v1886_v7 }
  0x87   :  { %1466 = vmatmul.mubr.msk.f32.gmra.mxu0 %vm151_vm0, %v1886_v7 }
  0x88   :  { %1502 = vmatmul.mubr.msk.f32.gmra.mxu1 %vm151_vm0, %v1886_v7 }
 0x103   :  { %v2148_v3 = vpop.f32.mrf.mxu0 }
 0x104   :  { %v2150_v4 = vpop.f32.mrf.mxu1 }
 0x105   :  { %v2152_v6 = vpop.f32.mrf.mxu0  ;;  %v1026_v7 = vmax.f32 %v2148_v3, %v2150_v4 }
 0x106   :  { %v2154_v26 = vpop.f32.mrf.mxu1 }
 0x107   :  { %v2156_v9 = vpop.f32.mrf.mxu0  ;;  %v1027_v16 = vmax.f32 %v2152_v6, %v2154_v26 }
 0x108   :  { %v2158_v10 = vpop.f32.mrf.mxu1 }
 0x109   :  { %v2160_v12 = vpop.f32.mrf.mxu0  ;;  %v1035_v20 = vmax.f32 %v2156_v9, %v2158_v10 }
 0x10a   :  { %v2162_v13 = vpop.f32.mrf.mxu1 }
 0x10b   :  { %v1036_v25 = vmax.f32 %v2160_v12, %v2162_v13 }
 0x143   :  { %v2166_v14 = vpop.f32.mrf.mxu0 }
 0x144   :  { %v2168_v15 = vpop.f32.mrf.mxu1  ;;  %v1028_v17 = vmax.f32 %v1026_v7, %v2166_v14 }
 0x145   :  { %v2173_v18 = vpop.f32.mrf.mxu0 }
 0x146   :  { %v2175_v19 = vpop.f32.mrf.mxu1  ;;  %v1029_v21 = vmax.f32 %v1027_v16, %v2173_v18  ;;  %v1030_v28 = vmax.f32 %v1028_v17, %v2168_v15 }
 0x147   :  { %v2182_v22 = vsel %vm1007_vm1, %v2175_v19, -inf  ;;  %v2184_v23 = vpop.f32.mrf.mxu0 }
 0x148   :  { %v2186_v24 = vpop.f32.mrf.mxu1  ;;  %v1037_v27 = vmax.f32 %v1035_v20, %v2184_v23  ;;  %v1031_v29 = vmax.f32 %v1029_v21, %v2182_v22 }
 0x149   :  { %v2193_v30 = vpop.f32.mrf.mxu0 }
 0x14a   :  { %v2195_v31 = vpop.f32.mrf.mxu1  ;;  %v1038_v32 = vmax.f32 %v1036_v25, %v2193_v30  ;;  %v1032_v34 = vmax.f32 %v1030_v28, %v1031_v29  ;;  %v1039_v36 = vmax.f32 %v1037_v27, %v2186_v24 }
 0x14b   :  { %v2200_v33 = vsel %vm1007_vm1, %v2195_v31, -inf }
 0x14c   :  { %v1040_v35 = vmax.f32 %v1038_v32, %v2200_v33  ;;  %1033 = vmax.xlane.f32.xlu0 %v1032_v34 }
 0x14e   :  { %v1041_v37 = vmax.f32 %v1039_v36, %v1040_v35 }
 0x150   :  { %1042 = vmax.xlane.f32.xlu0 %v1041_v37 }
 0x1d5   :  { %v1034_v42 = vpop.xlane.xlu0 %1033 }
 0x1d6   :  { %v2211_v43 = vmax.f32 %v2208_v41, %v1034_v42 }
 0x1d8   :  { %v1048_v45 = vsub.f32 %v2208_v41, %v2211_v43  ;;  %1137 = vst.msk [vmem:[#allocation2] sm:$0xff] %vm16_vm2, %v2211_v43  ;;  %1058 = vperm.xlu1 %1509, %v2211_v43  }
 0x1d9   :  { %v1043_v46 = vpop.xlane.xlu0 %1042 }
 0x1da   :  { %v2221_v47 = vmax.f32 %v2213_v44, %v1043_v46 }
 0x1dc   :  { %v1049_v48 = vsub.f32 %v2213_v44, %v2221_v47  ;;  %1138 = vst.msk [vmem:[#allocation2 + $0x8] sm:$0xff] %vm16_vm2, %v2221_v47  ;;  %1063 = vperm.xlu1 %1509, %v2221_v47  }
 0x1df   :  { %v1139_v47 = vld [vmem:[#allocation2] sm:$0xff] }
 0x253   :  { %v1059_v49 = vpop.permute.xlu1 %1058 }
 0x254   :  { %v1066_v50 = vsub.f32 %v2148_v3, %v1059_v49  ;;  %v1067_v51 = vsub.f32 %v2152_v6, %v1059_v49  ;;  %v1068_v52 = vsub.f32 %v2150_v4, %v1059_v49  ;;  %v1069_v53 = vsub.f32 %v2154_v26, %v1059_v49 }
 0x255   :  { %v1070_v56 = vsub.f32 %v2166_v14, %v1059_v49  ;;  %v1071_v0 = vsub.f32 %v2173_v18, %v1059_v49  ;;  %v1072_v7 = vsub.f32 %v2168_v15, %v1059_v49  ;;  %v1073_v17 = vsub.f32 %v2182_v22, %v1059_v49 }
 0x256   :  { %v1082_v54 = vmul.f32 1.442695, %v1066_v50  ;;  %v1084_v55 = vmul.f32 1.442695, %v1067_v51  ;;  %v1086_v57 = vmul.f32 1.442695, %v1068_v52 }
 0x257   :  { %v1088_v58 = vmul.f32 1.442695, %v1069_v53  ;;  %v1064_v59 = vpop.permute.xlu1 %1063  ;;  %v1090_v5 = vmul.f32 1.442695, %v1070_v56  ;;  %v1092_v21 = vmul.f32 1.442695, %v1071_v0 }
 0x258   :  { %1511 = vpow2.f32 %v1082_v54  ;;  %v1074_v60 = vsub.f32 %v2156_v9, %v1064_v59  ;;  %v1075_v61 = vsub.f32 %v2160_v12, %v1064_v59  ;;  %v1076_v62 = vsub.f32 %v2158_v10, %v1064_v59 }
 0x259   :  { %1513 = vpow2.f32 %v1084_v55  ;;  %v1077_v63 = vsub.f32 %v2162_v13, %v1064_v59  ;;  %v1078_v8 = vsub.f32 %v2184_v23, %v1064_v59  ;;  %v1079_v20 = vsub.f32 %v2193_v30, %v1064_v59 }
 0x25a   :  { %v1098_v1 = vmul.f32 1.442695, %v1074_v60  ;;  %v1100_v2 = vmul.f32 1.442695, %v1075_v61  ;;  %1515 = vpow2.f32 %v1086_v57  ;;  %v1102_v11 = vmul.f32 1.442695, %v1076_v62 }
 0x25b   :  { %1517 = vpow2.f32 %v1088_v58  ;;  %v1104_v16 = vmul.f32 1.442695, %v1077_v63  ;;  %v1106_v25 = vmul.f32 1.442695, %v1078_v8  ;;  %v1094_v27 = vmul.f32 1.442695, %v1072_v7 }
 0x25c   :  { %1519 = vpow2.f32 %v1098_v1  ;;  %v1080_v28 = vsub.f32 %v2186_v24, %v1064_v59  ;;  %v1096_v29 = vmul.f32 1.442695, %v1073_v17  ;;  %v1081_v32 = vsub.f32 %v2200_v33, %v1064_v59 }
 0x25d   :  { %1521 = vpow2.f32 %v1100_v2  ;;  %v1108_v34 = vmul.f32 1.442695, %v1079_v20  ;;  %v1052_v17 = vmul.f32 1.442695, %v1049_v48 }
 0x25e   :  { %1523 = vpow2.f32 %v1090_v5  ;;  %v1110_v35 = vmul.f32 1.442695, %v1080_v28  ;;  %v1112_v37 = vmul.f32 1.442695, %v1081_v32 }
 0x25f   :  { %1525 = vpow2.f32 %v1102_v11 }
 0x260   :  { %1527 = vpow2.f32 %v1104_v16  ;;  %v1050_v16 = vmul.f32 1.442695, %v1048_v45 }
 0x261   :  { %1529 = vpow2.f32 %v1092_v21  ;;  %v1046_v21 = vld [vmem:[#allocation3] sm:$0xff] }
 0x262   :  { %1531 = vpow2.f32 %v1106_v25 }
 0x263   :  { %1533 = vpow2.f32 %v1094_v27 }
 0x264   :  { %1535 = vpow2.f32 %v1096_v29  ;;  %v1047_v29 = vld [vmem:[#allocation3 + $0x8] sm:$0xff] }
 0x265   :  { %v1512_v22 = vpop.eup %1511  ;;  %1537 = vpow2.f32 %v1108_v34 }
 0x266   :  { %v1514_v36 = vpop.eup %1513  ;;  %1539 = vpow2.f32 %v1110_v35 }
 0x267   :  { %v1114_v38 = vadd.f32 %v1514_v36, %v1512_v22  ;;  %v1516_v39 = vpop.eup %1515  ;;  %1541 = vpow2.f32 %v1112_v37 }
 0x268   :  { %v1518_v40 = vpop.eup %1517  ;;  %1543 = vpow2.f32 %v1050_v16 }
 0x269   :  { %v1115_v42 = vadd.f32 %v1516_v39, %v1114_v38  ;;  %v1520_v46 = vpop.eup %1519  ;;  %1545 = vpow2.f32 %v1052_v17  ;;  %v1140_v38 = vld [vmem:[#allocation2 + $0x8] sm:$0xff] }
 0x26a   :  { %v1522_v49 = vpop.eup %1521 }
 0x26b   :  { %v1116_v50 = vadd.f32 %v1518_v40, %v1115_v42  ;;  %v1524_v51 = vpop.eup %1523  ;;  %v1123_v33 = vadd.f32 %v1522_v49, %v1520_v46 }
 0x26c   :  { %v1526_v52 = vpop.eup %1525 }
 0x26d   :  { %v1117_v53 = vadd.f32 %v1524_v51, %v1116_v50  ;;  %v1528_v54 = vpop.eup %1527  ;;  %v1124_v55 = vadd.f32 %v1526_v52, %v1123_v33 }
 0x26e   :  { %v1530_v56 = vpop.eup %1529 }
 0x26f   :  { %v1532_v57 = vpop.eup %1531  ;;  %v1118_v58 = vadd.f32 %v1530_v56, %v1117_v53  ;;  %v1125_v59 = vadd.f32 %v1528_v54, %v1124_v55 }
 0x270   :  { %v1534_v60 = vpop.eup %1533 }
 0x271   :  { %v1536_v61 = vpop.eup %1535  ;;  %v1119_v62 = vadd.f32 %v1534_v60, %v1118_v58  ;;  %v1126_v63 = vadd.f32 %v1532_v57, %v1125_v59 }
 0x272   :  { %v1538_v0 = vpop.eup %1537 }
 0x273   :  { %v1120_v1 = vadd.f32 %v1536_v61, %v1119_v62  ;;  %v1127_v2 = vadd.f32 %v1538_v0, %v1126_v63  ;;  %v1540_v5 = vpop.eup %1539 }
 0x274   :  { %v1542_v11 = vpop.eup %1541 }
 0x275   :  { %1121 = vadd.xlane.f32.xlu0 %v1120_v1  ;;  %v1128_v8 = vadd.f32 %v1540_v5, %v1127_v2  ;;  %v1544_v20 = vpop.eup %1543 }
 0x276   :  { %v1054_v25 = vmul.f32 %v1544_v20, %v1046_v21  ;;  %v1546_v27 = vpop.eup %1545 }
 0x277   :  { %v1129_v7 = vadd.f32 %v1542_v11, %v1128_v8  ;;  %v1055_v34 = vmul.f32 %v1546_v27, %v1047_v29 }
 0x279   :  { %1130 = vadd.xlane.f32.xlu1 %v1129_v7 }
 0x2fe   :  { %v1122_v28 = vpop.xlane.xlu0 %1121 }
 0x2ff   :  { %v1132_v32 = vadd.f32 %v1122_v28, %v1054_v25 }
 0x301   :  { %1135 = vst.msk [vmem:[#allocation3] sm:$0xff] %vm16_vm2, %v1132_v32 }
 0x302   :  { %v1131_v35 = vpop.xlane.xlu1 %1130 }
 0x303   :  { %v1133_v22 = vadd.f32 %v1131_v35, %v1055_v34 }
 0x305   :  { %1136 = vst.msk [vmem:[#allocation3 + $0x8] sm:$0xff] %vm16_vm2, %v1133_v22 }
 0x308   :  { %v1141_v41 = vld [vmem:[#allocation3] sm:$0xff] }
 0x309   :  { %1547 = vlog2.f32 %v1141_v41 }
 0x30c   :  { %v1142_v43 = vld [vmem:[#allocation3 + $0x8] sm:$0xff] }
 0x30d   :  { %1549 = vlog2.f32 %v1142_v43 }
 0x316   :  { %v1548_v44 = vpop.eup %1547 }
 0x317   :  { %v1144_v45 = vmul.f32 0.6931472, %v1548_v44 }
 0x319   :  { %v1147_v48 = vadd.f32 %v1144_v45, %v1139_v47 }
 0x31a   :  { %v1550_v36 = vpop.eup %1549 }
 0x31b   :  { %1167 = vperm.xlu0 %1510, %v1147_v48   ;;  %v1146_v37 = vmul.f32 0.6931472, %v1550_v36 }
 0x31d   :  { %v1148_v39 = vadd.f32 %v1146_v37, %v1140_v38 }
 0x31f   :  { %1172 = vperm.xlu1 %1509, %v1148_v39  }
 0x396   :  { %v1168_v40 = vpop.permute.xlu0 %1167 }
 0x397   :  { %v1175_v42 = vsub.f32 %v2148_v3, %v1168_v40  ;;  %v1176_v46 = vsub.f32 %v2152_v6, %v1168_v40  ;;  %v1177_v49 = vsub.f32 %v2150_v4, %v1168_v40  ;;  %v1178_v50 = vsub.f32 %v2154_v26, %v1168_v40 }
 0x398   :  { %v1179_v51 = vsub.f32 %v2166_v14, %v1168_v40  ;;  %v1180_v33 = vsub.f32 %v2173_v18, %v1168_v40  ;;  %v1181_v52 = vsub.f32 %v2168_v15, %v1168_v40  ;;  %v1182_v53 = vsub.f32 %v2175_v19, %v1168_v40 }
 0x399   :  { %1191 = vst [vmem:[#allocation5] sm:$0xff] %v1175_v42  ;;  %1192 = vst [vmem:[#allocation5 + $0x8] sm:$0xff] %v1176_v46 }
 0x39a   :  { %1193 = vst [vmem:[#allocation5 + $0x10] sm:$0xff] %v1177_v49  ;;  %1194 = vst [vmem:[#allocation5 + $0x18] sm:$0xff] %v1178_v50  ;;  %v1173_v3 = vpop.permute.xlu1 %1172 }
 0x39b   :  { %1195 = vst [vmem:[#allocation5 + $0x20] sm:$0xff] %v1179_v51  ;;  %1196 = vst [vmem:[#allocation5 + $0x28] sm:$0xff] %v1180_v33  ;;  %v1183_v4 = vsub.f32 %v2156_v9, %v1173_v3  ;;  %v1184_v6 = vsub.f32 %v2160_v12, %v1173_v3  ;;  %v1185_v26 = vsub.f32 %v2158_v10, %v1173_v3 }
 0x39c   :  { %1197 = vst [vmem:[#allocation5 + $0x30] sm:$0xff] %v1181_v52  ;;  %1198 = vst [vmem:[#allocation5 + $0x38] sm:$0xff] %v1182_v53  ;;  %v1186_v14 = vsub.f32 %v2162_v13, %v1173_v3  ;;  %v1187_v15 = vsub.f32 %v2184_v23, %v1173_v3  ;;  %v1188_v18 = vsub.f32 %v2193_v30, %v1173_v3 }
 0x39d   :  { %v1189_v19 = vsub.f32 %v2186_v24, %v1173_v3  ;;  %v1190_v54 = vsub.f32 %v2195_v31, %v1173_v3  ;;  %1199 = vst [vmem:[#allocation5 + $0x40] sm:$0xff] %v1183_v4  ;;  %1200 = vst [vmem:[#allocation5 + $0x48] sm:$0xff] %v1184_v6 }
 0x39e   :  { %1201 = vst [vmem:[#allocation5 + $0x50] sm:$0xff] %v1185_v26  ;;  %1202 = vst [vmem:[#allocation5 + $0x58] sm:$0xff] %v1186_v14 }
 0x39f   :  { %1203 = vst [vmem:[#allocation5 + $0x60] sm:$0xff] %v1187_v15  ;;  %1204 = vst [vmem:[#allocation5 + $0x68] sm:$0xff] %v1188_v18 }
 0x3a0   :  { %1205 = vst [vmem:[#allocation5 + $0x70] sm:$0xff] %v1189_v19  ;;  %1206 = vst [vmem:[#allocation5 + $0x78] sm:$0xff] %v1190_v54 }
 0x3a1   :  { %1562 = shalt.err (!%p1559_p4)
}
 0x3a2   :  { %s1577_s15 = smov 1024   ;;  %s1578_s16 = smov 64  }
 0x3a3   :  { %1218 = dma.vmem_to_hbm [thread:$0]  %s1213_s13, 2048, %s2273_s2, [#allocation6], %s1577_s15, %s1577_s15, %s1578_s16  }
 0x3a4   :  { %1571 = dma.done.wait [#allocation6], 2048  }
 0x3a5   :  { %1572 = vsyncadd [#allocation6], 4294965248 }
 0x3a6   :  { %1222 = vsyncpa [#allocation6], 1 }

</bundles_post_ra>
